<compile_context>
chip_gen: v5e
topology: v5e:2x2
jax: 0.10.0
libtpu: 0.0.40
codegen_flags: <defaults>
</compile_context>

<pallas_src>
import functools

import jax
import jax.numpy as jnp
from jax.experimental import pallas as pl
from jax.experimental.pallas import tpu as pltpu

_LANES = 128


def _ce_sum_kernel(p_ref, pi_ref, out_ref, acc_ref, *,
                   rows_valid, tb, steps, need_mask):
    """Accumulates sum_ij pi * log(p) for this split's row range.

    p_ref / pi_ref : (tb, L) streamed policy tiles (any float dtype, cast here)
    out_ref        : (1, 1) f32, one partial sum per split
    acc_ref        : (8, L) f32 VMEM scratch (vreg-wise accumulator)
    """
    c = pl.program_id(0)          # core split
    i = pl.program_id(1)          # reduction step within this split

    @pl.when(i == 0)
    def _init():
        acc_ref[...] = jnp.zeros_like(acc_ref)

    p = p_ref[...]
    pi = pi_ref[...]

    if need_mask:
        # Ragged tail (and fully-out-of-range clamped blocks): clamp p -> 1
        # and pi -> 0 BEFORE the log so unspecified data never reaches it.
        blk = c * steps + i       # unclamped logical block index
        row_ids = blk * tb + jax.lax.broadcasted_iota(jnp.int32, p.shape, 0)
        valid = row_ids < rows_valid
        p = jnp.where(valid, p, jnp.ones_like(p))
        pi = jnp.where(valid, pi, jnp.zeros_like(pi))

    prod = pi.astype(jnp.float32) * jnp.log(p.astype(jnp.float32))

    # Pure VALU accumulation: fold the (tb, L) products into the (8, L)
    # scratch with vreg-wise adds; the single cross-lane/sublane reduce
    # happens once, in the finalize branch below.
    r, L = prod.shape
    if r % 8 == 0:
        acc_ref[...] += prod.reshape(-1, 8, L).sum(axis=0)
    else:  # tiny full-extent block (fewer rows than one sublane tile)
        acc_ref[0:1, :] += jnp.sum(prod, axis=0, keepdims=True)

    @pl.when(i == pl.num_programs(1) - 1)
    def _finalize():
        out_ref[...] = jnp.sum(acc_ref[...], keepdims=True)


def alpha_loss(z_value, value_est, p_vector, pi_vector, *,
               block_rows=None, num_splits=2):
    """z_value, value_est: (B,); p_vector, pi_vector: (B, A). Returns f32 scalar."""
    B, A = p_vector.shape
    N = B * A

    # O(B) value-MSE term stays in plain XLA (fuses for free); folded in below.
    mse_sum = jnp.sum((value_est.astype(jnp.float32)
                       - z_value.astype(jnp.float32)) ** 2)

    # Zero-copy layouts: lane-dense flat slab when the element count allows,
    # otherwise stream the original (B, A) rows.  No padded HBM copies.
    if N % _LANES == 0:
        rows, L = N // _LANES, _LANES
        p2 = p_vector.reshape(rows, L)
        pi2 = pi_vector.reshape(rows, L)
    else:
        # TODO(synk): lane utilisation here is A/128, but a zero-copy ragged
        # layout still beats materialising padded copies of both tensors.
        rows, L = B, A
        p2, pi2 = p_vector, pi_vector

    # Sublane packing of the narrowest streamed dtype (8 f32, 16 bf16, 32 i8).
    itemsize = min(p2.dtype.itemsize, pi2.dtype.itemsize)
    pack = max(8, 32 // max(1, itemsize))

    if block_rows is None:
        block_rows = 8192 if itemsize < 4 else 4096
    block_rows = max(pack, (block_rows // pack) * pack)

    tb = min(block_rows, rows)
    if tb % pack != 0 and tb != rows:
        tb = max(pack, (tb // pack) * pack)

    nblocks = (rows + tb - 1) // tb
    splits = max(1, min(num_splits, nblocks))    # 2 -> one partial per v7x TC
    steps = (nblocks + splits - 1) // splits
    need_mask = (splits * steps * tb != rows)

    def pol_map(c, i):
        # Clamp so fully-out-of-range blocks (ragged split) stay in bounds;
        # the in-kernel mask zeroes their contribution.
        return (jnp.minimum(c * steps + i, nblocks - 1), 0)

    nbytes = lambda a: a.size * a.dtype.itemsize
    cost = pl.CostEstimate(
        flops=3 * N,
        transcendentals=N,
        bytes_accessed=nbytes(p_vector) + nbytes(pi_vector) + 4 * splits,
    )

    partials = pl.pallas_call(
        functools.partial(_ce_sum_kernel, rows_valid=rows, tb=tb, steps=steps,
                          need_mask=need_mask),
        out_shape=jax.ShapeDtypeStruct((splits, 1), jnp.float32),
        grid=(splits, steps),
        in_specs=[
            pl.BlockSpec((tb, L), pol_map),   # p   (streamed, cast in-kernel)
            pl.BlockSpec((tb, L), pol_map),   # pi  (streamed, cast in-kernel)
        ],
        out_specs=pl.BlockSpec((1, 1), lambda c, i: (c, 0)),
        scratch_shapes=[pltpu.VMEM((8, L), jnp.float32)],
        compiler_params=pltpu.CompilerParams(
            dimension_semantics=("parallel", "arbitrary"),
            vmem_limit_bytes=32 * 1024 * 1024,
        ),
        cost_estimate=cost,
    )(p2, pi2)

    ce_sum = jnp.sum(partials)
    return (mse_sum - ce_sum) / B


def _alpha_loss_ref(z_value, value_est, p_vector, pi_vector):
    mse = (value_est - z_value) ** 2
    ce = jnp.sum(pi_vector * jnp.log(p_vector), axis=-1)
    return jnp.mean(mse - ce)


if __name__ == "__main__":
    key = jax.random.PRNGKey(0)
    k1, k2, k3, k4 = jax.random.split(key, 4)

    B, A = 8, 32                        # batch, action-space size
    z_value = jax.random.uniform(k1, (B,), minval=-1.0, maxval=1.0)
    value_est = jax.random.uniform(k2, (B,), minval=-1.0, maxval=1.0)
    p_vector = jax.nn.softmax(jax.random.normal(k3, (B, A)), axis=-1)   # log-safe
    pi_vector = jax.nn.softmax(jax.random.normal(k4, (B, A)), axis=-1)

    loss = alpha_loss(z_value, value_est, p_vector, pi_vector)
    jax.block_until_ready(loss)

    ref = _alpha_loss_ref(z_value, value_est, p_vector, pi_vector)
    assert jnp.allclose(loss, ref, atol=1e-5, rtol=1e-5), (loss, ref)

    print("KERNEL_OK")
</pallas_src>

<mosaic_0001>
module attributes {stable_mosaic.version = 11 : i64} {
  func.func @_ce_sum_kernel(%arg0: i32, %arg1: i32, %arg2: memref<2x128xf32, #tpu.memory_space<vmem>>, %arg3: memref<2x128xf32, #tpu.memory_space<vmem>>, %arg4: memref<1x1xf32, #tpu.memory_space<vmem>>, %arg5: memref<8x128xf32, #tpu.memory_space<vmem>>) attributes {dimension_semantics = [#tpu.dimension_semantics<parallel>, #tpu.dimension_semantics<arbitrary>], iteration_bounds = array<i64: 1, 1>, scalar_prefetch = 0 : i64, scratch_operands = 1 : i64, tpu.core_type = #tpu.core_type<tc>, window_params = [{transform_indices = @transform_0, window_bounds = array<i64: 2, 128>}, {transform_indices = @transform_1, window_bounds = array<i64: 2, 128>}, {transform_indices = @transform_2, window_bounds = array<i64: 1, 1>}]} {
    %c0_i32 = arith.constant 0 : i32
    %0 = arith.cmpi eq, %arg1, %c0_i32 : i32
    %1 = arith.extui %0 : i1 to i32
    %c0_i32_0 = arith.constant 0 : i32
    %2 = arith.cmpi ne, %1, %c0_i32_0 : i32
    scf.if %2 {
      %cst_10 = arith.constant 0.000000e+00 : f32
      %15 = vector.broadcast %cst_10 : f32 to vector<8x128xf32>
      %c0_11 = arith.constant 0 : index
      %c0_12 = arith.constant 0 : index
      %16 = vector.load %arg5[%c0_11, %c0_12] : memref<8x128xf32, #tpu.memory_space<vmem>>, vector<8x128xf32>
      tpu.vector_store %arg5[%c0_11, %c0_12], %15 {strides = array<i32>} : memref<8x128xf32, #tpu.memory_space<vmem>>, vector<8x128xf32>,
    } else {
    }
    %c0 = arith.constant 0 : index
    %c0_1 = arith.constant 0 : index
    %3 = vector.load %arg2[%c0, %c0_1] : memref<2x128xf32, #tpu.memory_space<vmem>>, vector<2x128xf32>
    %c0_2 = arith.constant 0 : index
    %c0_3 = arith.constant 0 : index
    %4 = vector.load %arg3[%c0_2, %c0_3] : memref<2x128xf32, #tpu.memory_space<vmem>>, vector<2x128xf32>
    %5 = math.log %3 : vector<2x128xf32>
    %6 = arith.mulf %4, %5 : vector<2x128xf32>
    %c0_4 = arith.constant 0 : index
    %c0_5 = arith.constant 0 : index
    %7 = vector.load %arg5[%c0_4, %c0_5] : memref<8x128xf32, #tpu.memory_space<vmem>>, vector<1x128xf32>
    %cst = arith.constant dense<0.000000e+00> : vector<128xf32>
    %8 = vector.multi_reduction <add>, %6, %cst [0] : vector<2x128xf32> to vector<128xf32>
    %9 = vector.shape_cast %8 : vector<128xf32> to vector<1x128xf32>
    %10 = arith.addf %7, %9 : vector<1x128xf32>
    %c0_6 = arith.constant 0 : index
    %c0_7 = arith.constant 0 : index
    %11 = vector.load %arg5[%c0_6, %c0_7] : memref<8x128xf32, #tpu.memory_space<vmem>>, vector<1x128xf32>
    tpu.vector_store %arg5[%c0_6, %c0_7], %10 {strides = array<i32>} : memref<8x128xf32, #tpu.memory_space<vmem>>, vector<1x128xf32>,
    %c0_i32_8 = arith.constant 0 : i32
    %12 = arith.cmpi eq, %arg1, %c0_i32_8 : i32
    %13 = arith.extui %12 : i1 to i32
    %c0_i32_9 = arith.constant 0 : i32
    %14 = arith.cmpi ne, %13, %c0_i32_9 : i32
    scf.if %14 {
      %c0_10 = arith.constant 0 : index
      %c0_11 = arith.constant 0 : index
      %15 = vector.load %arg5[%c0_10, %c0_11] : memref<8x128xf32, #tpu.memory_space<vmem>>, vector<8x128xf32>
      %16 = vector.shape_cast %15 : vector<8x128xf32> to vector<1x8x128xf32>
      %cst_12 = arith.constant dense<0.000000e+00> : vector<1xf32>
      %17 = vector.multi_reduction <add>, %16, %cst_12 [1, 2] : vector<1x8x128xf32> to vector<1xf32>
      %18 = vector.shape_cast %17 : vector<1xf32> to vector<1x1x1xf32>
      %19 = vector.extract %18[0, 0, 0] : f32 from vector<1x1x1xf32>
      %20 = vector.broadcast %19 : f32 to vector<1x1xf32>
      %c0_13 = arith.constant 0 : index
      %c0_14 = arith.constant 0 : index
      %21 = vector.load %arg4[%c0_13, %c0_14] : memref<1x1xf32, #tpu.memory_space<vmem>>, vector<1x1xf32>
      tpu.vector_store %arg4[%c0_13, %c0_14], %20 {strides = array<i32>} : memref<1x1xf32, #tpu.memory_space<vmem>>, vector<1x1xf32>,
    } else {
    }
    return
  }
  func.func @transform_0(%arg0: i32, %arg1: i32) -> (i32, i32) {
    %c1_i32 = arith.constant 1 : i32
    %0 = arith.muli %arg0, %c1_i32 : i32
    %1 = arith.addi %0, %arg1 : i32
    %c0_i32 = arith.constant 0 : i32
    %2 = arith.minsi %1, %c0_i32 : i32
    %c0_i32_0 = arith.constant 0 : i32
    %c0_i32_1 = arith.constant 0 : i32
    return %2, %c0_i32_0 : i32, i32
  }
  func.func @transform_1(%arg0: i32, %arg1: i32) -> (i32, i32) {
    %c1_i32 = arith.constant 1 : i32
    %0 = arith.muli %arg0, %c1_i32 : i32
    %1 = arith.addi %0, %arg1 : i32
    %c0_i32 = arith.constant 0 : i32
    %2 = arith.minsi %1, %c0_i32 : i32
    %c0_i32_0 = arith.constant 0 : i32
    %c0_i32_1 = arith.constant 0 : i32
    return %2, %c0_i32_0 : i32, i32
  }
  func.func @transform_2(%arg0: i32, %arg1: i32) -> (i32, i32) {
    %c0_i32 = arith.constant 0 : i32
    %c0_i32_0 = arith.constant 0 : i32
    return %arg0, %c0_i32 : i32, i32
  }
}

</mosaic_0001>

<bundles_post_ra>
// kernel: tpu_custom_call.1
= control target key start
LH: loop header
LB: loop body
LE: loop exit
PB: predicated region body
PF: predicated region fallthrough
CT: control target
= control target key end

     0   :  { %7 = vsyncpa [#allocation4], 0  ;;  %s229_s0 = inlined_call_operand.hbm [shape: f32[2,128], index: 0, kind: input, shape index: {}]   ;;  %s230_s1 = inlined_call_operand.hbm [shape: f32[2,128], index: 1, kind: input, shape index: {}]   ;;  %s231_s2 = inlined_call_operand.hbm [shape: f32[1,1], index: 2, kind: output, shape index: {}]  }
   0x1   :  { %8 = vsyncpa [#allocation7], 0 }
   0x2   :  { %9 = vsyncpa [#allocation5], 0  ;;  %s20_s11 = sshll.u32 %s229_s0, 4  ;;  %s201_s12 = smov [#allocation3]   ;;  %s21_s11 = int_to_ptr.hbm [resolvable:$true] %s20_s11 }
   0x3   :  { %s22_s13 = sshll.u32 %s201_s12, 4  ;;  %s36_s16 = sshll.u32 %s230_s1, 4  ;;  %s23_s13 = int_to_ptr.vmem [resolvable:$true] %s22_s13  ;;  %s37_s16 = int_to_ptr.hbm [resolvable:$true] %s36_s16 }
   0x4   :  { %25 = dma.hbm_to_vmem [thread:$0]  %s21_s11, 32, %s23_s13, [#allocation4]  }
   0x5   :  { %s202_s17 = smov [#allocation6]  }
   0x6   :  { %s38_s18 = sshll.u32 %s202_s17, 4  ;;  %s39_s18 = int_to_ptr.vmem [resolvable:$true] %s38_s18 }
   0x7   :  { %41 = dma.hbm_to_vmem [thread:$0]  %s37_s16, 32, %s39_s18, [#allocation7]  }
   0x8   :  { %195 = dma.done.wait [#allocation4], 32  }
   0x9   :  { %196 = vsyncadd [#allocation4], 4294967264 }
   0xa   :  { %197 = dma.done.wait [#allocation7], 32  }
   0xb   :  { %198 = vsyncadd [#allocation7], 4294967264  ;;  %v203_v0 = vmov 0.0   ;;  %v61_v1 = vld [vmem:[#allocation3] sm:$0x3]  ;;  %vm67_vm0 = vcmask 1041408  }
   0xc   :  { %60 = vst [vmem:[#allocation2] sm:$0xff] %v203_v0  ;;  %121 = vlog2.f32 %v61_v1  ;;  %v62_v3 = vld [vmem:[#allocation6] sm:$0x3]  ;;  %s204_s0 = smov [#allocation8]   ;;  %s100_s21 = sshll.u32 %s231_s2, 4  ;;  %vm91_vm1 = vcmask 0   ;;  %s101_s21 = int_to_ptr.hbm [resolvable:$true] %s100_s21 }
   0xd   :  { %s98_s1 = sshll.u32 %s204_s0, 4  ;;  %s99_s1 = int_to_ptr.vmem [resolvable:$true] %s98_s1 }
  0x12   :  { %v122_v2 = vpop.eup %121 }
  0x13   :  { %v64_v4 = vmul.f32 0.6931472, %v122_v2  ;;  %v66_v12 = vld [vmem:[#allocation2] sm:$0x1] }
  0x15   :  { %v65_v5 = vmul.f32 %v64_v4, %v62_v3 }
  0x17   :  { %v68_v6 = vsel %vm67_vm0, %v65_v5, 0.0 }
  0x18   :  { %v69_v7 = vrot.slane %v68_v6, 4 }
  0x1a   :  { %v70_v8 = vadd.f32 %v69_v7, %v68_v6 }
  0x1c   :  { %v71_v9 = vrot.slane %v70_v8, 2 }
  0x1e   :  { %v72_v10 = vadd.f32 %v71_v9, %v70_v8 }
  0x20   :  { %v73_v11 = vrot.slane %v72_v10, 1 }
  0x22   :  { %v74_v13 = vadd.f32 %v73_v11, %v72_v10 }
  0x24   :  { %v75_v14 = vadd.f32 %v74_v13, %v66_v12 }
  0x26   :  { %76 = vst [vmem:[#allocation2] sm:$0x1] %v75_v14 }
  0x2d   :  { %v80_v15 = vld [vmem:[#allocation2] sm:$0xff] }
  0x2e   :  { %81 = vadd.xlane.f32.xlu0 %v80_v15 }
  0xa1   :  { %v82_v16 = vpop.xlane.xlu0 %81 }
  0xa2   :  { %v83_v17 = vrot.slane %v82_v16, 4 }
  0xa4   :  { %v84_v18 = vadd.f32 %v83_v17, %v82_v16 }
  0xa6   :  { %v85_v19 = vrot.slane %v84_v18, 2 }
  0xa8   :  { %v86_v20 = vadd.f32 %v85_v19, %v84_v18 }
  0xaa   :  { %v87_v21 = vrot.slane %v86_v20, 1 }
  0xac   :  { %v88_v22 = vadd.f32 %v87_v21, %v86_v20 }
  0xae   :  { %115 = vpush %v88_v22 }
  0xdf   :  { %s116_s22 = spop %115 }
  0xe0   :  { %v90_v23 = vstv %s116_s22 }
  0xe1   :  { %92 = vst.msk [vmem:[#allocation8] sm:$0x1] %vm91_vm1, %v90_v23 }
  0xe2   :  { %103 = dma.vmem_to_hbm [thread:$0]  %s99_s1, 16, %s101_s21, [#allocation5]  }
  0xe3   :  { %199 = dma.done.wait [#allocation5], 16  }
  0xe4   :  { %200 = vsyncadd [#allocation5], 4294967280 }
  0xe5   :  { %108 = vsyncpa [#allocation4], 1 }
  0xe6   :  { %109 = vsyncpa [#allocation7], 1 }
  0xe7   :  { %110 = vsyncpa [#allocation5], 1 }

</bundles_post_ra>
